<compile_context>
chip_gen: v6e
topology: v6e:2x2x1
jax: 0.10.0
libtpu: 0.0.40
codegen_flags: <defaults>
</compile_context>

<pallas_src>
import functools

import jax
import jax.numpy as jnp
from jax.experimental import pallas as pl
from jax.experimental.pallas import tpu as pltpu

LANES = 128


def _device_kind():
    try:
        return jax.devices()[0].device_kind.lower()
    except Exception:
        return ""


def _num_tensorcores(kind):
    # v7x has 2 TensorCores per chip; v5e/v6e have 1.  Unknown -> 1 (safe).
    return 2 if "v7" in kind else 1


def _max_row_tile(kind):
    # v5e: ~820 GB/s HBM and 16 MiB default scoped VMEM -> 4096-row blocks.
    # v6e/v7x: 8192-row (4 MiB f32) blocks amortize per-step overhead better.
    if "v5" in kind:
        return 4096
    return 8192


def _mse_logits_kernel(x_ref, label_ref, obj_ref, out_ref, acc_ref, *,
                       steps, blocks, row_tile, ragged_blk, rows_full,
                       lane_rem, acc_rows, overhang):
    c = pl.program_id(0)           # chunk (maps to a TensorCore on megacore)
    i = pl.program_id(1)           # sequential reduction step within a chunk
    blk = c * steps + i            # global block index

    @pl.when(i == 0)
    def _():
        acc_ref[...] = jnp.zeros_like(acc_ref)

    x = x_ref[...].astype(jnp.float32)
    lbl = label_ref[...].astype(jnp.float32)
    obj = obj_ref[...].astype(jnp.float32)

    w = 1.0 + 4.0 * obj                      # == 5*obj + 1*(1-obj); one fma
    d = jax.nn.sigmoid(x) - lbl
    contrib = d * d * w

    def fold(t):
        # Fold the (row_tile, 128) tile into the vector accumulator.
        if acc_rows == 8:
            return t.reshape(-1, 8, LANES).sum(axis=0)
        return jnp.sum(t, axis=0, keepdims=True)

    if ragged_blk is not None:
        # Only the single ragged tile pays for iota/compare/select masking.
        @pl.when(blk < ragged_blk)
        def _():
            acc_ref[...] += fold(contrib)

        @pl.when(blk == ragged_blk)
        def _():
            row_base = ragged_blk * row_tile                  # static
            grow = row_base + jax.lax.broadcasted_iota(
                jnp.int32, contrib.shape, 0)
            valid = grow < rows_full
            if lane_rem:
                lidx = jax.lax.broadcasted_iota(jnp.int32, contrib.shape, 1)
                valid = valid | ((grow == rows_full) & (lidx < lane_rem))
            acc_ref[...] += fold(jnp.where(valid, contrib, 0.0))
        # blk > ragged_blk (grid overhang duplicate on the 2-TC split): skipped.
    elif overhang:
        @pl.when(blk < blocks)
        def _():
            acc_ref[...] += fold(contrib)
    else:
        acc_ref[...] += fold(contrib)

    @pl.when(i == pl.num_programs(1) - 1)
    def _():
        # Lane-dense (acc_rows, 128) store; final scalar reduce is in wrapper.
        out_ref[...] = acc_ref[...]


def mse_with_logits_loss(x, label, label_obj, reduction="mean",
                         _max_row_tile_override=None):
    """Pallas implementation of MSEWithLogitsLoss.forward (mean / sum)."""
    assert x.shape == label.shape == label_obj.shape
    n = int(x.size)

    if reduction == "mean":
        scale = 1.0 / float(n)
    elif reduction == "sum":
        scale = 1.0
    else:
        # TODO(synk): reduction='none' (full elementwise output) not implemented.
        raise NotImplementedError("only 'mean' and 'sum' reductions are implemented")

    kind = _device_kind()
    num_tc = _num_tensorcores(kind)
    max_tile = _max_row_tile_override or _max_row_tile(kind)

    rows_full, lane_rem = divmod(n, LANES)
    rows = rows_full + (1 if lane_rem else 0)

    def to_slab(a):
        # Keep the original dtype (kernel casts).  Only the <128-element lane
        # remainder is padded; the row direction stays ragged (masked in-kernel).
        flat = a.reshape(-1)
        if lane_rem:
            flat = jnp.pad(flat, (0, LANES - lane_rem))
        return flat.reshape(rows, LANES)

    x2, l2, o2 = to_slab(x), to_slab(label), to_slab(label_obj)

    if rows <= max_tile:
        row_tile = rows           # single block == full array rows (always legal)
        blocks = 1
    else:
        row_tile = max_tile       # multiple of 8; last block ragged & masked
        blocks = pl.cdiv(rows, row_tile)

    num_chunks = num_tc if (num_tc > 1 and blocks >= 2) else 1
    steps = pl.cdiv(blocks, num_chunks)
    overhang = num_chunks * steps > blocks          # only possible on 2-TC parts

    needs_mask = (rows % row_tile != 0) or (lane_rem != 0)
    ragged_blk = (blocks - 1) if needs_mask else None
    acc_rows = 8 if row_tile % 8 == 0 else 1

    if overhang:
        def index_map(ci, ii):
            # Clamp the (at most one) overhanging grid step to the last real
            # block; the kernel skips its accumulation via blk >= blocks.
            return (jnp.minimum(ci * steps + ii, blocks - 1), 0)
    else:
        def index_map(ci, ii):
            return (ci * steps + ii, 0)

    in_spec = pl.BlockSpec((row_tile, LANES), index_map)

    kernel = functools.partial(
        _mse_logits_kernel,
        steps=steps, blocks=blocks, row_tile=row_tile, ragged_blk=ragged_blk,
        rows_full=rows_full, lane_rem=lane_rem, acc_rows=acc_rows,
        overhang=overhang)

    # Explicit scoped-VMEM budget: 3 inputs x 2 pipeline buffers x block bytes,
    # plus headroom; capped below v7x's 64 MiB per-TC physical VMEM.
    block_bytes = sum(2 * row_tile * LANES * a.dtype.itemsize
                      for a in (x2, l2, o2))
    vmem_limit = int(min(60 << 20, max(32 << 20, block_bytes + (8 << 20))))

    cost = pl.CostEstimate(
        flops=6 * n,
        transcendentals=n,
        bytes_accessed=int(sum(a.size * a.dtype.itemsize
                               for a in (x2, l2, o2))
                           + num_chunks * acc_rows * LANES * 4))

    partials = pl.pallas_call(
        kernel,
        out_shape=jax.ShapeDtypeStruct((num_chunks * acc_rows, LANES),
                                       jnp.float32),
        grid_spec=pltpu.PrefetchScalarGridSpec(
            num_scalar_prefetch=0,
            grid=(num_chunks, steps),
            in_specs=[in_spec, in_spec, in_spec],
            out_specs=pl.BlockSpec((acc_rows, LANES), lambda ci, ii: (ci, 0)),
            scratch_shapes=[pltpu.VMEM((acc_rows, LANES), jnp.float32)],
        ),
        compiler_params=pltpu.CompilerParams(
            dimension_semantics=("parallel", "arbitrary"),
            vmem_limit_bytes=vmem_limit),
        cost_estimate=cost,
    )(x2, l2, o2)

    return jnp.sum(partials) * scale


def _reference(x, label, label_obj, reduction="mean"):
    s = jax.nn.sigmoid(x.astype(jnp.float32))
    loss = (s - label.astype(jnp.float32)) ** 2
    loss = loss * label_obj * 5.0 + loss * (1.0 - label_obj) * 1.0
    if reduction == "mean":
        return loss.mean()
    return loss.sum()


if __name__ == "__main__":
    key = jax.random.PRNGKey(0)
    k1, k2, k3 = jax.random.split(key, 3)

    # NCHW inputs, as the PyTorch module expects.
    B, C, H, W = 2, 4, 16, 16
    x = jax.random.normal(k1, (B, C, H, W), dtype=jnp.float32)
    label = jax.random.uniform(k2, (B, C, H, W), dtype=jnp.float32)
    label_obj = (jax.random.uniform(k3, (B, C, H, W)) > 0.7).astype(jnp.float32)

    loss = jax.block_until_ready(mse_with_logits_loss(x, label, label_obj, "mean"))
    ref = _reference(x, label, label_obj, "mean")
    assert jnp.allclose(loss, ref, rtol=1e-5, atol=1e-6), (loss, ref)

    loss_s = jax.block_until_ready(mse_with_logits_loss(x, label, label_obj, "sum"))
    ref_s = _reference(x, label, label_obj, "sum")
    assert jnp.allclose(loss_s, ref_s, rtol=1e-5, atol=1e-5), (loss_s, ref_s)

    # Ragged (non 128-divisible) path: lane-remainder mask in the last block.
    shp = (3, 5, 7, 11)
    xr = jax.random.normal(k1, shp, dtype=jnp.float32)
    lr = jax.random.uniform(k2, shp, dtype=jnp.float32)
    orr = (jax.random.uniform(k3, shp) > 0.5).astype(jnp.float32)
    loss_r = jax.block_until_ready(mse_with_logits_loss(xr, lr, orr, "mean"))
    ref_r = _reference(xr, lr, orr, "mean")
    assert jnp.allclose(loss_r, ref_r, rtol=1e-5, atol=1e-6), (loss_r, ref_r)

    # Multi-block + ragged-last-block path (forced small row tile for testing).
    shp2 = (2, 3, 40, 50)
    xm = jax.random.normal(k1, shp2, dtype=jnp.float32)
    lm = jax.random.uniform(k2, shp2, dtype=jnp.float32)
    om = (jax.random.uniform(k3, shp2) > 0.6).astype(jnp.float32)
    loss_m = jax.block_until_ready(
        mse_with_logits_loss(xm, lm, om, "mean", _max_row_tile_override=32))
    ref_m = _reference(xm, lm, om, "mean")
    assert jnp.allclose(loss_m, ref_m, rtol=1e-5, atol=1e-6), (loss_m, ref_m)

    print("KERNEL_OK")
</pallas_src>

<mosaic_0001>
module attributes {stable_mosaic.version = 11 : i64} {
  func.func @_mse_logits_kernel(%arg0: i32, %arg1: i32, %arg2: memref<16x128xf32, #tpu.memory_space<vmem>>, %arg3: memref<16x128xf32, #tpu.memory_space<vmem>>, %arg4: memref<16x128xf32, #tpu.memory_space<vmem>>, %arg5: memref<8x128xf32, #tpu.memory_space<vmem>>, %arg6: memref<8x128xf32, #tpu.memory_space<vmem>>) attributes {dimension_semantics = [#tpu.dimension_semantics<parallel>, #tpu.dimension_semantics<arbitrary>], iteration_bounds = array<i64: 1, 1>, scalar_prefetch = 0 : i64, scratch_operands = 1 : i64, tpu.core_type = #tpu.core_type<tc>, window_params = [{transform_indices = @transform_0, window_bounds = array<i64: 16, 128>}, {transform_indices = @transform_1, window_bounds = array<i64: 16, 128>}, {transform_indices = @transform_2, window_bounds = array<i64: 16, 128>}, {transform_indices = @transform_3, window_bounds = array<i64: 8, 128>}]} {
    %c0_i32 = arith.constant 0 : i32
    %0 = arith.cmpi eq, %arg1, %c0_i32 : i32
    %1 = arith.extui %0 : i1 to i32
    %c0_i32_0 = arith.constant 0 : i32
    %2 = arith.cmpi ne, %1, %c0_i32_0 : i32
    scf.if %2 {
      %cst_15 = arith.constant 0.000000e+00 : f32
      %26 = vector.broadcast %cst_15 : f32 to vector<8x128xf32>
      %c0_16 = arith.constant 0 : index
      %c0_17 = arith.constant 0 : index
      %27 = vector.load %arg6[%c0_16, %c0_17] : memref<8x128xf32, #tpu.memory_space<vmem>>, vector<8x128xf32>
      tpu.vector_store %arg6[%c0_16, %c0_17], %26 {strides = array<i32>} : memref<8x128xf32, #tpu.memory_space<vmem>>, vector<8x128xf32>,
    } else {
    }
    %c0 = arith.constant 0 : index
    %c0_1 = arith.constant 0 : index
    %3 = vector.load %arg2[%c0, %c0_1] : memref<16x128xf32, #tpu.memory_space<vmem>>, vector<16x128xf32>
    %c0_2 = arith.constant 0 : index
    %c0_3 = arith.constant 0 : index
    %4 = vector.load %arg3[%c0_2, %c0_3] : memref<16x128xf32, #tpu.memory_space<vmem>>, vector<16x128xf32>
    %c0_4 = arith.constant 0 : index
    %c0_5 = arith.constant 0 : index
    %5 = vector.load %arg4[%c0_4, %c0_5] : memref<16x128xf32, #tpu.memory_space<vmem>>, vector<16x128xf32>
    %cst = arith.constant 4.000000e+00 : f32
    %6 = vector.broadcast %cst : f32 to vector<16x128xf32>
    %7 = arith.mulf %6, %5 : vector<16x128xf32>
    %cst_6 = arith.constant 1.000000e+00 : f32
    %8 = vector.broadcast %cst_6 : f32 to vector<16x128xf32>
    %9 = arith.addf %8, %7 : vector<16x128xf32>
    %10 = arith.negf %3 : vector<16x128xf32>
    %11 = math.exp %10 : vector<16x128xf32>
    %cst_7 = arith.constant 1.000000e+00 : f32
    %12 = vector.broadcast %cst_7 : f32 to vector<16x128xf32>
    %13 = arith.addf %12, %11 : vector<16x128xf32>
    %14 = arith.divf %12, %13 : vector<16x128xf32>
    %15 = arith.subf %14, %4 : vector<16x128xf32>
    %16 = arith.mulf %15, %15 : vector<16x128xf32>
    %17 = arith.mulf %16, %9 : vector<16x128xf32>
    %c0_8 = arith.constant 0 : index
    %c0_9 = arith.constant 0 : index
    %18 = vector.load %arg6[%c0_8, %c0_9] : memref<8x128xf32, #tpu.memory_space<vmem>>, vector<8x128xf32>
    %19 = vector.shape_cast %17 : vector<16x128xf32> to vector<2x8x128xf32>
    %cst_10 = arith.constant dense<0.000000e+00> : vector<8x128xf32>
    %20 = vector.multi_reduction <add>, %19, %cst_10 [0] : vector<2x8x128xf32> to vector<8x128xf32>
    %21 = arith.addf %18, %20 : vector<8x128xf32>
    %c0_11 = arith.constant 0 : index
    %c0_12 = arith.constant 0 : index
    %22 = vector.load %arg6[%c0_11, %c0_12] : memref<8x128xf32, #tpu.memory_space<vmem>>, vector<8x128xf32>
    tpu.vector_store %arg6[%c0_11, %c0_12], %21 {strides = array<i32>} : memref<8x128xf32, #tpu.memory_space<vmem>>, vector<8x128xf32>,
    %c0_i32_13 = arith.constant 0 : i32
    %23 = arith.cmpi eq, %arg1, %c0_i32_13 : i32
    %24 = arith.extui %23 : i1 to i32
    %c0_i32_14 = arith.constant 0 : i32
    %25 = arith.cmpi ne, %24, %c0_i32_14 : i32
    scf.if %25 {
      %c0_15 = arith.constant 0 : index
      %c0_16 = arith.constant 0 : index
      %26 = vector.load %arg6[%c0_15, %c0_16] : memref<8x128xf32, #tpu.memory_space<vmem>>, vector<8x128xf32>
      %c0_17 = arith.constant 0 : index
      %c0_18 = arith.constant 0 : index
      %27 = vector.load %arg5[%c0_17, %c0_18] : memref<8x128xf32, #tpu.memory_space<vmem>>, vector<8x128xf32>
      tpu.vector_store %arg5[%c0_17, %c0_18], %26 {strides = array<i32>} : memref<8x128xf32, #tpu.memory_space<vmem>>, vector<8x128xf32>,
    } else {
    }
    return
  }
  func.func @transform_0(%arg0: i32, %arg1: i32) -> (i32, i32) {
    %c1_i32 = arith.constant 1 : i32
    %0 = arith.muli %arg0, %c1_i32 : i32
    %1 = arith.addi %0, %arg1 : i32
    %c0_i32 = arith.constant 0 : i32
    %c0_i32_0 = arith.constant 0 : i32
    return %1, %c0_i32 : i32, i32
  }
  func.func @transform_1(%arg0: i32, %arg1: i32) -> (i32, i32) {
    %c1_i32 = arith.constant 1 : i32
    %0 = arith.muli %arg0, %c1_i32 : i32
    %1 = arith.addi %0, %arg1 : i32
    %c0_i32 = arith.constant 0 : i32
    %c0_i32_0 = arith.constant 0 : i32
    return %1, %c0_i32 : i32, i32
  }
  func.func @transform_2(%arg0: i32, %arg1: i32) -> (i32, i32) {
    %c1_i32 = arith.constant 1 : i32
    %0 = arith.muli %arg0, %c1_i32 : i32
    %1 = arith.addi %0, %arg1 : i32
    %c0_i32 = arith.constant 0 : i32
    %c0_i32_0 = arith.constant 0 : i32
    return %1, %c0_i32 : i32, i32
  }
  func.func @transform_3(%arg0: i32, %arg1: i32) -> (i32, i32) {
    %c0_i32 = arith.constant 0 : i32
    %c0_i32_0 = arith.constant 0 : i32
    return %arg0, %c0_i32 : i32, i32
  }
}

</mosaic_0001>

<bundles_post_ra>
// kernel: tpu_custom_call.1
= control target key start
LH: loop header
LB: loop body
LE: loop exit
PB: predicated region body
PF: predicated region fallthrough
CT: control target
= control target key end

     0   :  { %8 = vsyncpa [#allocation4], 0  ;;  %s272_s0 = inlined_call_operand.hbm [shape: f32[16,128], index: 0, kind: input, shape index: {}]   ;;  %s273_s1 = inlined_call_operand.hbm [shape: f32[16,128], index: 1, kind: input, shape index: {}]   ;;  %s274_s2 = inlined_call_operand.hbm [shape: f32[16,128], index: 2, kind: input, shape index: {}]   ;;  %s275_s3 = inlined_call_operand.hbm [shape: f32[8,128], index: 3, kind: output, shape index: {}]  }
   0x1   :  { %9 = vsyncpa [#allocation7], 0 }
   0x2   :  { %10 = vsyncpa [#allocation5], 0  ;;  %s234_s12 = smov [#allocation6]   ;;  %s235_s14 = smov [#allocation3]  }
   0x3   :  { %s36_s13 = sshll.u32 %s234_s12, 4  ;;  %s20_s15 = sshll.u32 %s235_s14, 4  ;;  %s37_s13 = int_to_ptr.vmem [resolvable:$true] %s36_s13  ;;  %s21_s15 = int_to_ptr.vmem [resolvable:$true] %s20_s15 }
   0x4   :  { %s156_s16 = scalar_lea.vmem %s37_s13, 256  ;;  %p161_p1 = scmp.lt.s32.totalorder %s37_s13, %s37_s13 }
   0x5   :  { %p157_p0 = scmp.ne.s32.totalorder %s37_s13, %s156_s16  ;;  %p162_p2 = scmp.lt.s32.totalorder %s156_s16, %s156_s16 }
   0x7   :  { %p163_p3 = por %p162_p2, %p161_p1 }
   0x9   :  { %p164_p4 = pnand %p163_p3, %p157_p0 }
   0xb   :  { %167 = shalt.err (!%p164_p4)
}
   0xc   :  { %s236_s17 = smov 128   ;;  %s237_s18 = smov 8  }
   0xd   :  { %42 = dma.hbm_to_vmem [thread:$0]  %s273_s1, 256, %s37_s13, [#allocation7], %s236_s17, %s236_s17, %s237_s18  }
   0xe   :  { %s176_s21 = scalar_lea.vmem %s21_s15, 256  ;;  %p181_p6 = scmp.lt.s32.totalorder %s21_s15, %s21_s15 }
   0xf   :  { %p177_p5 = scmp.ne.s32.totalorder %s21_s15, %s176_s21  ;;  %p182_p7 = scmp.lt.s32.totalorder %s176_s21, %s176_s21 }
  0x11   :  { %p183_p8 = por %p182_p7, %p181_p6 }
  0x13   :  { %p184_p9 = pnand %p183_p8, %p177_p5 }
  0x15   :  { %187 = shalt.err (!%p184_p9)
}
  0x16   :  { %26 = dma.hbm_to_vmem [thread:$0]  %s272_s0, 256, %s21_s15, [#allocation4], %s236_s17, %s236_s17, %s237_s18  }
  0x17   :  { %s238_s24 = smov [#allocation8]  }
  0x18   :  { %s52_s25 = sshll.u32 %s238_s24, 4  ;;  %s53_s25 = int_to_ptr.vmem [resolvable:$true] %s52_s25 }
  0x19   :  { %s196_s26 = scalar_lea.vmem %s53_s25, 256  ;;  %p201_p11 = scmp.lt.s32.totalorder %s53_s25, %s53_s25 }
  0x1a   :  { %p197_p10 = scmp.ne.s32.totalorder %s53_s25, %s196_s26  ;;  %p202_p12 = scmp.lt.s32.totalorder %s196_s26, %s196_s26 }
  0x1c   :  { %p203_p13 = por %p202_p12, %p201_p11 }
  0x1e   :  { %p204_p0 = pnand %p203_p13, %p197_p10 }
  0x20   :  { %207 = shalt.err (!%p204_p0)
}
  0x21   :  { %58 = dma.hbm_to_vmem [thread:$0]  %s274_s2, 256, %s53_s25, [#allocation7], %s236_s17, %s236_s17, %s237_s18  }
  0x22   :  { %228 = dma.done.wait [#allocation4], 256  }
  0x23   :  { %229 = vsyncadd [#allocation4], 4294967040 }
  0x24   :  { %230 = dma.done.wait [#allocation7], 512  }
  0x25   :  { %231 = vsyncadd [#allocation7], 4294966784  ;;  %v79_v0 = vld [vmem:[#allocation3] sm:$0xff]  ;;  %v80_v1 = vld [vmem:[#allocation3 + $0x8] sm:$0xff]  ;;  %s239_s0 = smov [#allocation9]  }
  0x26   :  { %v132_v2 = vmul.f32 -1.442695, %v79_v0  ;;  %v133_v3 = vmul.f32 -1.442695, %v80_v1  ;;  %v83_v8 = vld [vmem:[#allocation8] sm:$0xff]  ;;  %v84_v9 = vld [vmem:[#allocation8 + $0x8] sm:$0xff] }
  0x27   :  { %v85_v10 = vmul.f32 4.0, %v83_v8  ;;  %v81_v11 = vld [vmem:[#allocation6] sm:$0xff]  ;;  %v86_v12 = vmul.f32 4.0, %v84_v9  ;;  %v82_v13 = vld [vmem:[#allocation6 + $0x8] sm:$0xff]  ;;  %s122_s2 = sshll.u32 %s239_s0, 4  ;;  %s123_s2 = int_to_ptr.vmem [resolvable:$true] %s122_s2 }
  0x28   :  { %140 = vpow2.f32 %v132_v2  ;;  %s208_s28 = scalar_lea.vmem %s123_s2, 128  ;;  %p213_p2 = scmp.lt.s32.totalorder %s123_s2, %s123_s2 }
  0x29   :  { %142 = vpow2.f32 %v133_v3  ;;  %v87_v16 = vadd.f32 1.0, %v85_v10  ;;  %v88_v18 = vadd.f32 1.0, %v86_v12  ;;  %p209_p1 = scmp.ne.s32.totalorder %s123_s2, %s208_s28  ;;  %p214_p3 = scmp.lt.s32.totalorder %s208_s28, %s208_s28 }
  0x2b   :  { %p215_p4 = por %p214_p3, %p213_p2 }
  0x2d   :  { %p216_p5 = pnand %p215_p4, %p209_p1 }
  0x35   :  { %v141_v4 = vpop.eup %140 }
  0x36   :  { %v143_v5 = vpop.eup %142  ;;  %v95_v6 = vadd.f32 1.0, %v141_v4 }
  0x37   :  { %v96_v7 = vadd.f32 1.0, %v143_v5 }
  0x38   :  { %144 = vrcp.f32 %v95_v6 }
  0x39   :  { %146 = vrcp.f32 %v96_v7 }
  0x45   :  { %v145_v14 = vpop.eup %144 }
  0x46   :  { %v147_v15 = vpop.eup %146  ;;  %v101_v17 = vsub.f32 %v145_v14, %v81_v11 }
  0x47   :  { %v102_v19 = vsub.f32 %v147_v15, %v82_v13 }
  0x48   :  { %v103_v20 = vmul.f32 %v101_v17, %v101_v17 }
  0x49   :  { %v104_v21 = vmul.f32 %v102_v19, %v102_v19 }
  0x4a   :  { %v105_v22 = vmul.f32 %v103_v20, %v87_v16 }
  0x4b   :  { %v106_v23 = vmul.f32 %v104_v21, %v88_v18 }
  0x4d   :  { %v108_v24 = vadd.f32 %v106_v23, %v105_v22 }
  0x4f   :  { %115 = vst [vmem:[#allocation9] sm:$0xff] %v108_v24 }
  0x50   :  { %219 = shalt.err (!%p216_p5)
}
  0x51   :  { %125 = dma.vmem_to_hbm [thread:$0]  %s123_s2, 128, %s275_s3, [#allocation5]  }
  0x52   :  { %232 = dma.done.wait [#allocation5], 128  }
  0x53   :  { %233 = vsyncadd [#allocation5], 4294967168 }
  0x54   :  { %129 = vsyncpa [#allocation4], 1 }
  0x55   :  { %130 = vsyncpa [#allocation7], 1 }
  0x56   :  { %131 = vsyncpa [#allocation5], 1 }

</bundles_post_ra>
